<compile_context>
chip_gen: v7x
topology: tpu7x:2x2x1
jax: 0.10.0
libtpu: 0.0.40
codegen_flags: <defaults>
</compile_context>

<pallas_src>
import functools

import jax
import jax.numpy as jnp
from jax.experimental import pallas as pl
from jax.experimental.pallas import tpu as pltpu


def _dropblock_kernel(x_ref, mask_ref, o_ref, *, tile_nc, sub, mask_resident):
    # x_ref:    (tile_nc, tile_hw) slab of flattened feature maps.
    # mask_ref: (nc_pad, 1) resident mask OR (tile_nc, 1) per-tile mask,
    #           pre-scaled by 1/(1-p).
    if mask_resident:
        start = pl.multiple_of(pl.program_id(0) * tile_nc, sub)
        m = mask_ref[pl.ds(start, tile_nc), :]
    else:
        m = mask_ref[...]
    o_ref[...] = x_ref[...] * m


def _vmem_limit_bytes():
    """Per-chip scoped-VMEM budget: 3/4 of physical, capped at 64 MiB."""
    try:
        cap = int(pltpu.get_tpu_info().vmem_capacity_bytes)
    except Exception:  # fallback if query unavailable (e.g. interpret mode)
        cap = 128 << 20
    # 128-MiB parts (v5e/v6e) -> 64 MiB; 64-MiB v7x -> 48 MiB.
    return int(min(64 << 20, cap * 3 // 4))


def _plan_tiles(nc, hw, itemsize, vmem_limit):
    """Returns (tile_nc, tile_hw, sub, hw_pad): VMEM-bounded, dtype-aware tiles."""
    sub = max(8, 32 // itemsize)  # native sublane tile: f32 8, bf16 16, int8 32
    # Per-buffer target: x-in and out are each double-buffered (~4x live);
    # stay comfortably inside the scoped limit but above the ~2 MiB knee where
    # per-grid-step overhead (~0.35 us) starts to matter.
    target = min(8 << 20, max(2 << 20, vmem_limit // 6))

    if sub * hw * itemsize <= target:
        # Fits untiled along lanes: keep full extent (fast path when hw%128==0).
        hw_pad = hw
        tile_hw = hw
    else:
        # Must tile the lane axis -> blocks must be multiples of 128.
        hw_pad = pl.cdiv(hw, 128) * 128
        tile_hw = min(hw_pad, max(128, (target // (sub * itemsize)) // 128 * 128))

    tile_nc = max(sub, (target // (tile_hw * itemsize)) // sub * sub)
    if tile_nc >= nc:
        tile_nc = nc
        if pl.cdiv(hw_pad, tile_hw) == 1 and nc >= 2 * sub:
            # >= 2 "parallel" grid steps so v7x can shard across its 2 TCs.
            tile_nc = pl.cdiv(pl.cdiv(nc, 2), sub) * sub
    return tile_nc, tile_hw, sub, hw_pad


def dropblock(x, key, p=0.1, training=True, donate_x=False):
    """JAX/Pallas equivalent of nn.Dropout2d(p)(x) for NCHW input x."""
    if (not training) or p == 0.0:
        return x

    N, C, H, W = x.shape
    NC, HW = N * C, H * W
    itemsize = x.dtype.itemsize

    # Per-(n, c) Bernoulli keep mask with the 1/(1-p) scale folded in, so the
    # kernel body is a single multiply and captures no constants.
    keep = jax.random.bernoulli(key, 1.0 - p, (N, C))
    mask = keep.astype(x.dtype) * jnp.asarray(1.0 / (1.0 - p), x.dtype)

    vmem_limit = _vmem_limit_bytes()
    tile_nc, tile_hw, sub, hw_pad = _plan_tiles(NC, HW, itemsize, vmem_limit)

    x2 = x.reshape(NC, HW)
    if hw_pad != HW:
        # TODO(synk): rare slow path (HW too large to fit untiled and not a
        # 128-multiple); the pad + final slice cost one extra memory pass.
        x2 = jnp.pad(x2, ((0, 0), (0, hw_pad - HW)))

    grid = (pl.cdiv(NC, tile_nc), pl.cdiv(hw_pad, tile_hw))

    # Keep small masks resident in VMEM (single DMA, no per-step narrow copy).
    # A (rows, 1) VMEM buffer pads to 128 lanes, so fall back to per-tile
    # blocks once the resident copy would stop being cheap.
    nc_pad = grid[0] * tile_nc
    mask_resident = nc_pad * 128 * itemsize <= (2 << 20)
    m2 = mask.reshape(NC, 1)
    if mask_resident:
        if nc_pad != NC:
            m2 = jnp.pad(m2, ((0, nc_pad - NC), (0, 0)))
        mask_spec = pl.BlockSpec((nc_pad, 1), lambda i, j: (0, 0))
    else:
        mask_spec = pl.BlockSpec((tile_nc, 1), lambda i, j: (i, 0))

    kernel = functools.partial(
        _dropblock_kernel, tile_nc=tile_nc, sub=sub, mask_resident=mask_resident)

    cost = pl.CostEstimate(
        flops=NC * hw_pad,
        transcendentals=0,
        bytes_accessed=2 * NC * hw_pad * itemsize + NC * itemsize,
    )

    out = pl.pallas_call(
        kernel,
        out_shape=jax.ShapeDtypeStruct((NC, hw_pad), x.dtype),
        grid=grid,
        in_specs=[
            pl.BlockSpec((tile_nc, tile_hw), lambda i, j: (i, j)),
            mask_spec,
        ],
        out_specs=pl.BlockSpec((tile_nc, tile_hw), lambda i, j: (i, j)),
        compiler_params=pltpu.CompilerParams(
            dimension_semantics=("parallel", "parallel"),
            vmem_limit_bytes=vmem_limit,
        ),
        cost_estimate=cost,
        input_output_aliases={0: 0} if donate_x else {},
    )(x2, m2)

    if hw_pad != HW:
        out = out[:, :HW]
    return out.reshape(N, C, H, W)


if __name__ == "__main__":
    key = jax.random.PRNGKey(0)
    kx, kmask = jax.random.split(key)

    # Small NCHW shapes consistent with a 2D feature-map module: (N, C, H, W)
    x = jax.random.normal(kx, (2, 4, 16, 16), dtype=jnp.float32)

    p = 0.1
    y = dropblock(x, kmask, p=p, training=True)
    y = jax.block_until_ready(y)

    # Pure-JAX reference of Dropout2d training semantics with the same key.
    keep_ref = jax.random.bernoulli(kmask, 1.0 - p, (2, 4)).astype(x.dtype)
    y_ref = x * keep_ref[:, :, None, None] / (1.0 - p)

    assert y.shape == x.shape and y.dtype == x.dtype
    assert jnp.allclose(y, y_ref, rtol=1e-6, atol=1e-6), "mismatch vs reference"

    print("KERNEL_OK")
</pallas_src>

<mosaic_0001>
module attributes {stable_mosaic.version = 11 : i64} {
  func.func @_dropblock_kernel(%arg0: i32, %arg1: i32, %arg2: memref<8x256xf32, #tpu.memory_space<vmem>>, %arg3: memref<8x1xf32, #tpu.memory_space<vmem>>, %arg4: memref<8x256xf32, #tpu.memory_space<vmem>>) attributes {dimension_semantics = [#tpu.dimension_semantics<parallel>, #tpu.dimension_semantics<parallel>], iteration_bounds = array<i64: 1, 1>, scalar_prefetch = 0 : i64, scratch_operands = 0 : i64, tpu.core_type = #tpu.core_type<tc>, window_params = [{transform_indices = @transform_0, window_bounds = array<i64: 8, 256>}, {pipeline_mode = #tpu.pipeline_mode<synchronous>, transform_indices = @transform_1, window_bounds = array<i64: 8, 1>}, {transform_indices = @transform_2, window_bounds = array<i64: 8, 256>}]} {
    %c8_i32 = arith.constant 8 : i32
    %0 = arith.muli %arg0, %c8_i32 : i32
    %1 = tpu.assume_multiple %0, 8 : i32
    %2 = arith.index_cast %1 : i32 to index
    %c0 = arith.constant 0 : index
    %3 = vector.load %arg3[%2, %c0] : memref<8x1xf32, #tpu.memory_space<vmem>>, vector<8x1xf32>
    %c0_0 = arith.constant 0 : index
    %c0_1 = arith.constant 0 : index
    %4 = vector.load %arg2[%c0_0, %c0_1] : memref<8x256xf32, #tpu.memory_space<vmem>>, vector<8x256xf32>
    %5 = vector.broadcast %3 : vector<8x1xf32> to vector<8x256xf32>
    %6 = arith.mulf %4, %5 : vector<8x256xf32>
    %c0_2 = arith.constant 0 : index
    %c0_3 = arith.constant 0 : index
    %7 = vector.load %arg4[%c0_2, %c0_3] : memref<8x256xf32, #tpu.memory_space<vmem>>, vector<8x256xf32>
    tpu.vector_store %arg4[%c0_2, %c0_3], %6 {strides = array<i32>} : memref<8x256xf32, #tpu.memory_space<vmem>>, vector<8x256xf32>,
    return
  }
  func.func @transform_0(%arg0: i32, %arg1: i32) -> (i32, i32) {
    %c0_i32 = arith.constant 0 : i32
    return %arg0, %arg1 : i32, i32
  }
  func.func @transform_1(%arg0: i32, %arg1: i32) -> (i32, i32) {
    %c0_i32 = arith.constant 0 : i32
    %c0_i32_0 = arith.constant 0 : i32
    %c0_i32_1 = arith.constant 0 : i32
    return %c0_i32, %c0_i32_0 : i32, i32
  }
  func.func @transform_2(%arg0: i32, %arg1: i32) -> (i32, i32) {
    %c0_i32 = arith.constant 0 : i32
    return %arg0, %arg1 : i32, i32
  }
}

</mosaic_0001>

<bundles_post_ra>
// kernel: tpu_custom_call.1
= control target key start
LH: loop header
LB: loop body
LE: loop exit
PB: predicated region body
PF: predicated region fallthrough
CT: control target
= control target key end

     0   :  { %7 = vsyncpa [#allocation3], 0  ;;  %s198_s0 = inlined_call_operand.hbm [shape: f32[8,256], index: 0, kind: input, shape index: {}]   ;;  %s199_s1 = inlined_call_operand.hbm [shape: f32[8,1], index: 1, kind: input, shape index: {}]   ;;  %s200_s2 = inlined_call_operand.hbm [shape: f32[8,256], index: 2, kind: output, shape index: {}]  }
   0x1   :  { %8 = vsyncpa [#allocation6], 0 }
   0x2   :  { %9 = vsyncpa [#allocation4], 0  ;;  %s143_s9 = smov [#allocation2]   ;;  %s144_s11 = smov [#allocation5]  }
   0x3   :  { %s16_s10 = sshll.u32 %s143_s9, 4  ;;  %s26_s12 = sshll.u32 %s144_s11, 4  ;;  %s17_s10 = int_to_ptr.vmem [resolvable:$true] %s16_s10  ;;  %s27_s12 = int_to_ptr.vmem [resolvable:$true] %s26_s12 }
   0x4   :  { %s71_s15 = scalar_lea.hbm %s198_s0, 256 }
   0x5   :  { %p72_p0 = scmp.ne.s32.totalorder %s198_s0, %s71_s15  ;;  %p75_p1 = scmp.lt.u32.totalorder %s71_s15, %s198_s0 }
   0x7   :  { %p77_p2 = pnand %p75_p1, %p72_p0 }
   0x9   :  { %80 = shalt.err (!%p77_p2)
}
   0xa   :  { %s81_s20 = scalar_lea.vmem %s17_s10, 256  ;;  %p86_p4 = scmp.lt.s32.totalorder %s17_s10, %s17_s10 }
   0xb   :  { %p82_p3 = scmp.ne.s32.totalorder %s17_s10, %s81_s20  ;;  %p87_p5 = scmp.lt.s32.totalorder %s81_s20, %s81_s20 }
   0xd   :  { %p88_p6 = por %p87_p5, %p86_p4 }
   0xf   :  { %p89_p7 = pnand %p88_p6, %p82_p3 }
  0x11   :  { %92 = shalt.err (!%p89_p7)
}
  0x12   :  { %19 = dma.hbm_to_vmem [thread:$0]  %s198_s0, 256, %s17_s10, [#allocation3]  }
  0x13   :  { %s93_s25 = scalar_lea.hbm %s199_s1, 128 }
  0x14   :  { %p94_p8 = scmp.ne.s32.totalorder %s199_s1, %s93_s25  ;;  %p97_p9 = scmp.lt.u32.totalorder %s93_s25, %s199_s1 }
  0x16   :  { %p99_p10 = pnand %p97_p9, %p94_p8 }
  0x18   :  { %102 = shalt.err (!%p99_p10)
}
  0x19   :  { %s103_s30 = scalar_lea.vmem %s27_s12, 128  ;;  %p108_p12 = scmp.lt.s32.totalorder %s27_s12, %s27_s12 }
  0x1a   :  { %p104_p11 = scmp.ne.s32.totalorder %s27_s12, %s103_s30  ;;  %p109_p13 = scmp.lt.s32.totalorder %s103_s30, %s103_s30 }
  0x1c   :  { %p110_p0 = por %p109_p13, %p108_p12 }
  0x1e   :  { %p111_p1 = pnand %p110_p0, %p104_p11 }
  0x20   :  { %114 = shalt.err (!%p111_p1)
}
  0x21   :  { %29 = dma.hbm_to_vmem [thread:$0]  %s199_s1, 128, %s27_s12, [#allocation6]  }
  0x22   :  { %137 = dma.done.wait [#allocation3], 256  }
  0x23   :  { %138 = vsyncadd [#allocation3], 4294967040 }
  0x24   :  { %139 = dma.done.wait [#allocation6], 128  }
  0x25   :  { %140 = vsyncadd [#allocation6], 4294967168  ;;  %v145_v0 = vmov 0   ;;  %v38_v1 = vld [vmem:[#allocation5] sm:$0xff]  ;;  %v39_v2 = vld [vmem:[#allocation2] sm:$0xff]  ;;  %s146_s4 = smov [#allocation7]  }
  0x26   :  { %70 = vset.pattern.permute.xlu0 %v145_v0  ;;  %v40_v3 = vld [vmem:[#allocation2 + $0x8] sm:$0xff]  ;;  %s56_s5 = sshll.u32 %s146_s4, 4  ;;  %s57_s5 = int_to_ptr.vmem [resolvable:$true] %s56_s5 }
  0x27   :  { %43 = vperm.xlu0 %70, %v38_v1   ;;  %s115_s6 = scalar_lea.vmem %s57_s5, 256  ;;  %p120_p3 = scmp.lt.s32.totalorder %s57_s5, %s57_s5 }
  0x28   :  { %p116_p2 = scmp.ne.s32.totalorder %s57_s5, %s115_s6  ;;  %p121_p4 = scmp.lt.s32.totalorder %s115_s6, %s115_s6 }
  0x2a   :  { %p122_p5 = por %p121_p4, %p120_p3 }
  0x2c   :  { %p123_p6 = pnand %p122_p5, %p116_p2 }
  0xa6   :  { %v44_v4 = vpop.permute.xlu0 %43 }
  0xa7   :  { %v46_v5 = vmul.f32 %v44_v4, %v39_v2  ;;  %v47_v6 = vmul.f32 %v44_v4, %v40_v3 }
  0xa9   :  { %48 = vst [vmem:[#allocation7] sm:$0xff] %v46_v5  ;;  %49 = vst [vmem:[#allocation7 + $0x8] sm:$0xff] %v47_v6 }
  0xaa   :  { %126 = shalt.err (!%p123_p6)
}
  0xab   :  { %s127_s8 = scalar_lea.hbm %s200_s2, 256 }
  0xac   :  { %p128_p7 = scmp.ne.s32.totalorder %s200_s2, %s127_s8  ;;  %p131_p8 = scmp.lt.u32.totalorder %s127_s8, %s200_s2 }
  0xae   :  { %p133_p9 = pnand %p131_p8, %p128_p7 }
  0xb0   :  { %136 = shalt.err (!%p133_p9)
}
  0xb1   :  { %59 = dma.vmem_to_hbm [thread:$0]  %s57_s5, 256, %s200_s2, [#allocation4]  }
  0xb2   :  { %141 = dma.done.wait [#allocation4], 256  }
  0xb3   :  { %142 = vsyncadd [#allocation4], 4294967040 }
  0xb4   :  { %63 = vsyncpa [#allocation3], 1 }
  0xb5   :  { %64 = vsyncpa [#allocation6], 1 }
  0xb6   :  { %65 = vsyncpa [#allocation4], 1 }

</bundles_post_ra>
